<compile_context>
chip_gen: v7x
topology: tpu7x:2x2x1
jax: 0.10.0
libtpu: 0.0.40
codegen_flags: <defaults>
</compile_context>

<pallas_src>
import functools
import math

import jax
import jax.numpy as jnp
from jax.experimental import pallas as pl
from jax.experimental.pallas import tpu as pltpu


# ----------------------------------------------------------------------------
# helpers
# ----------------------------------------------------------------------------

_GELU_COEF = math.sqrt(2.0 / 3.14)     # the reference module uses 3.14, not pi
_VMEM_LIMIT = 48 * 1024 * 1024         # < v7x 64 MiB/TC physical; >> tile needs


def _gelu(x):
    return 0.5 * x * (1.0 + jnp.tanh(_GELU_COEF * (x + 0.044715 * x * x * x)))


def _round_up(v, m):
    return ((v + m - 1) // m) * m


def _tile(dim, pref):
    """Return (tile, padded_dim).  `pref` must be a multiple of the hardware
    granule (8 sublanes / 128 lanes).  Small dims get a single full-dim tile
    (always layout-legal); big dims get the preferred tile plus zero padding
    up to a tile multiple -- never a full-dim fallback."""
    if dim <= pref:
        return dim, dim
    return pref, _round_up(dim, pref)


def _pad2(a, rows, cols):
    r, c = a.shape
    if r == rows and c == cols:
        return a
    return jnp.pad(a, ((0, rows - r), (0, cols - c)))


# ----------------------------------------------------------------------------
# tiled linear kernel (bf16 MXU inputs, f32 VMEM accumulator, fused epilogue)
# ----------------------------------------------------------------------------

def _linear_kernel(x_ref, w_ref, b_ref, o_ref, acc_ref, *, activation):
    k = pl.program_id(2)

    @pl.when(k == 0)
    def _init():
        acc_ref[...] = jnp.zeros_like(acc_ref)

    acc_ref[...] += jnp.dot(
        x_ref[...].astype(jnp.bfloat16), w_ref[...],
        preferred_element_type=jnp.float32)

    @pl.when(k == pl.num_programs(2) - 1)
    def _finalize():
        y = acc_ref[...] + b_ref[...].astype(jnp.float32)
        if activation == "gelu":
            y = _gelu(y)
        o_ref[...] = y.astype(o_ref.dtype)


def linear(x, w_bf16, bias, *, activation=None, out_dtype=jnp.bfloat16,
           tm=512, tn=512, tk=256):
    """y = act(x @ w + bias).  x:(M,K)  w:(K,N) bf16  bias:(1,N) f32.
    NOTE: tk=256 targets v6e/v7x's 256-wide MXU; use tk=128 on v5e."""
    M, K = x.shape
    K2, N = w_bf16.shape
    assert K == K2
    tm_, Mp = _tile(M, tm)
    tn_, Np = _tile(N, tn)
    tk_, Kp = _tile(K, tk)

    xp = _pad2(x, Mp, Kp)
    wp = _pad2(w_bf16, Kp, Np)
    bp = _pad2(bias, 1, Np)

    out = pl.pallas_call(
        functools.partial(_linear_kernel, activation=activation),
        out_shape=jax.ShapeDtypeStruct((Mp, Np), out_dtype),
        grid_spec=pltpu.PrefetchScalarGridSpec(
            num_scalar_prefetch=0,
            grid=(Mp // tm_, Np // tn_, Kp // tk_),
            in_specs=[
                pl.BlockSpec((tm_, tk_), lambda i, j, k: (i, k)),
                pl.BlockSpec((tk_, tn_), lambda i, j, k: (k, j)),
                pl.BlockSpec((1, tn_), lambda i, j, k: (0, j)),
            ],
            out_specs=pl.BlockSpec((tm_, tn_), lambda i, j, k: (i, j)),
            scratch_shapes=[pltpu.VMEM((tm_, tn_), jnp.float32)],
        ),
        compiler_params=pltpu.CompilerParams(
            dimension_semantics=("parallel", "parallel", "arbitrary"),
            vmem_limit_bytes=_VMEM_LIMIT,
        ),
    )(xp, wp, bp)
    return out[:M, :N] if (Mp, Np) != (M, N) else out


# ----------------------------------------------------------------------------
# linear + bias + residual + fused LayerNorm epilogue
#   emits: y (new bf16 residual stream)  and  LN(y) (bf16, next matmul input)
# ----------------------------------------------------------------------------

def _linear_residual_ln_kernel(x_ref, w_ref, b_ref, r_ref, g_ref, s_ref,
                               y_ref, ln_ref, acc_ref, *, eps):
    k = pl.program_id(1)

    @pl.when(k == 0)
    def _init():
        acc_ref[...] = jnp.zeros_like(acc_ref)

    acc_ref[...] += jnp.dot(
        x_ref[...].astype(jnp.bfloat16), w_ref[...],
        preferred_element_type=jnp.float32)

    @pl.when(k == pl.num_programs(1) - 1)
    def _finalize():
        y = (acc_ref[...] + b_ref[...].astype(jnp.float32)
             + r_ref[...].astype(jnp.float32))
        y_ref[...] = y.astype(y_ref.dtype)
        mean = jnp.mean(y, axis=-1, keepdims=True)
        yc = y - mean
        var = jnp.mean(yc * yc, axis=-1, keepdims=True)      # unbiased=False
        ln = (yc * jax.lax.rsqrt(var + eps) * g_ref[...].astype(jnp.float32)
              + s_ref[...].astype(jnp.float32))
        ln_ref[...] = ln.astype(ln_ref.dtype)


def linear_residual_ln(x, w_bf16, bias, residual, gamma, beta, *, eps=1e-5,
                       out_dtype=jnp.bfloat16, tm=512, tk=256):
    """(y, LN(y)) with y = x @ w + bias + residual.  Whole N (= emb_dim) row
    lives in one output tile so the LN row stats are computed in-register."""
    M, K = x.shape
    K2, N = w_bf16.shape
    assert K == K2 and residual.shape == (M, N)
    tm_, Mp = _tile(M, tm)
    tk_, Kp = _tile(K, tk)

    xp = _pad2(x, Mp, Kp)
    wp = _pad2(w_bf16, Kp, N)
    rp = _pad2(residual, Mp, N)

    y, ln = pl.pallas_call(
        functools.partial(_linear_residual_ln_kernel, eps=eps),
        out_shape=(jax.ShapeDtypeStruct((Mp, N), out_dtype),
                   jax.ShapeDtypeStruct((Mp, N), out_dtype)),
        grid_spec=pltpu.PrefetchScalarGridSpec(
            num_scalar_prefetch=0,
            grid=(Mp // tm_, Kp // tk_),
            in_specs=[
                pl.BlockSpec((tm_, tk_), lambda i, k: (i, k)),
                pl.BlockSpec((tk_, N), lambda i, k: (k, 0)),
                pl.BlockSpec((1, N), lambda i, k: (0, 0)),
                pl.BlockSpec((tm_, N), lambda i, k: (i, 0)),
                pl.BlockSpec((1, N), lambda i, k: (0, 0)),
                pl.BlockSpec((1, N), lambda i, k: (0, 0)),
            ],
            out_specs=[pl.BlockSpec((tm_, N), lambda i, k: (i, 0)),
                       pl.BlockSpec((tm_, N), lambda i, k: (i, 0))],
            scratch_shapes=[pltpu.VMEM((tm_, N), jnp.float32)],
        ),
        compiler_params=pltpu.CompilerParams(
            dimension_semantics=("parallel", "arbitrary"),
            vmem_limit_bytes=_VMEM_LIMIT,
        ),
    )(xp, wp, bias, rp, gamma, beta)
    if Mp != M:
        y, ln = y[:M], ln[:M]
    return y, ln


# ----------------------------------------------------------------------------
# standalone LayerNorm (only needed for norm1 of layer 0, on the embeddings)
# ----------------------------------------------------------------------------

def _layernorm_kernel(x_ref, g_ref, b_ref, o_ref, *, eps):
    x = x_ref[...].astype(jnp.float32)
    mean = jnp.mean(x, axis=-1, keepdims=True)
    xc = x - mean
    var = jnp.mean(xc * xc, axis=-1, keepdims=True)
    y = (xc * jax.lax.rsqrt(var + eps) * g_ref[...].astype(jnp.float32)
         + b_ref[...].astype(jnp.float32))
    o_ref[...] = y.astype(o_ref.dtype)


def layernorm(x, gamma, beta, *, eps=1e-5, out_dtype=jnp.bfloat16, tm=256):
    M, D = x.shape
    tm_, Mp = _tile(M, tm)
    xp = jnp.pad(x, ((0, Mp - M), (0, 0))) if Mp != M else x
    out = pl.pallas_call(
        functools.partial(_layernorm_kernel, eps=eps),
        out_shape=jax.ShapeDtypeStruct((Mp, D), out_dtype),
        grid_spec=pltpu.PrefetchScalarGridSpec(
            num_scalar_prefetch=0,
            grid=(Mp // tm_,),
            in_specs=[
                pl.BlockSpec((tm_, D), lambda i: (i, 0)),
                pl.BlockSpec((1, D), lambda i: (0, 0)),
                pl.BlockSpec((1, D), lambda i: (0, 0)),
            ],
            out_specs=pl.BlockSpec((tm_, D), lambda i: (i, 0)),
        ),
        compiler_params=pltpu.CompilerParams(
            dimension_semantics=("parallel",),
            vmem_limit_bytes=_VMEM_LIMIT),
    )(xp, gamma, beta)
    return out[:M] if Mp != M else out


# ----------------------------------------------------------------------------
# causal flash attention (online softmax, all heads per block, decoupled
# q/kv tiles, masked kv tiles skipped, lane-dense single-store finalize)
# ----------------------------------------------------------------------------

def _flash_attn_kernel(q_ref, k_ref, v_ref, o_ref, m_ref, l_ref, acc_ref,
                       *, q_block, kv_block, num_heads, head_dim):
    qi = pl.program_id(1)
    kj = pl.program_id(2)
    # last kv tile that can contribute to this q tile (element-offset causal)
    last_kj = ((qi + 1) * q_block - 1) // kv_block

    @pl.when(kj == 0)
    def _init():
        m_ref[...] = jnp.full_like(m_ref, -1e30)
        l_ref[...] = jnp.zeros_like(l_ref)
        acc_ref[...] = jnp.zeros_like(acc_ref)

    @pl.when(kj <= last_kj)                  # skip fully-masked kv tiles
    def _compute():
        q = q_ref[...]                       # (H, tq, hd) bf16 (scale folded)
        k = k_ref[...]                       # (H, tk, hd) bf16
        s = jax.lax.dot_general(             # K fed untransposed to the MXU
            q, k, (((2,), (2,)), ((0,), (0,))),
            preferred_element_type=jnp.float32)            # (H, tq, tk)

        row = qi * q_block + jax.lax.broadcasted_iota(
            jnp.int32, (q_block, kv_block), 0)
        col = kj * kv_block + jax.lax.broadcasted_iota(
            jnp.int32, (q_block, kv_block), 1)
        s = jnp.where((col <= row)[None, :, :], s, -1e30)  # finite, no NaNs

        m_prev = m_ref[...]
        m_new = jnp.maximum(m_prev, jnp.max(s, axis=-1, keepdims=True))
        alpha = jnp.exp(m_prev - m_new)
        p = jnp.exp(s - m_new)

        l_ref[...] = alpha * l_ref[...] + jnp.sum(p, axis=-1, keepdims=True)
        acc_ref[...] = alpha * acc_ref[...] + jax.lax.dot_general(
            p.astype(v_ref.dtype), v_ref[...], (((2,), (1,)), ((0,), (0,))),
            preferred_element_type=jnp.float32)            # (H, tq, hd)
        m_ref[...] = m_new

    @pl.when(kj == last_kj)                  # last contributing kv tile
    def _finalize():
        inv_l = pl.reciprocal(l_ref[...], approx=True)     # EUP, nearly free
        ctx = acc_ref[...] * inv_l                         # (H, tq, hd) f32
        # one lane-dense (tq, H*hd) slab, single unmasked store
        full = jnp.concatenate([ctx[h] for h in range(num_heads)], axis=-1)
        o_ref[...] = full.astype(o_ref.dtype)


def flash_attention(q, k, v, *, q_block=128, kv_block=256,
                    out_dtype=jnp.bfloat16):
    """q,k,v: (B, H, T, hd) bf16 (q already scaled).  Returns (B, T, H*hd)."""
    B, H, T, hd = q.shape
    tq = min(q_block, _round_up(T, 8))
    tk = min(kv_block, _round_up(T, 8))
    lcm = tq * tk // math.gcd(tq, tk)
    Tp = _round_up(T, lcm)
    if Tp != T:
        pad = ((0, 0), (0, 0), (0, Tp - T), (0, 0))
        q, k, v = jnp.pad(q, pad), jnp.pad(k, pad), jnp.pad(v, pad)
    num_q, num_kv = Tp // tq, Tp // tk
    d_out = H * hd

    kernel = functools.partial(_flash_attn_kernel, q_block=tq, kv_block=tk,
                               num_heads=H, head_dim=hd)

    def q_map(b, qi, kj):
        return (b, 0, qi, 0)

    def kv_map(b, qi, kj):
        # clamp: skipped (fully masked) kv tiles reuse the last fetched block
        return (b, 0, jnp.minimum(kj, ((qi + 1) * tq - 1) // tk), 0)

    out = pl.pallas_call(
        kernel,
        out_shape=jax.ShapeDtypeStruct((B, Tp, d_out), out_dtype),
        grid_spec=pltpu.PrefetchScalarGridSpec(
            num_scalar_prefetch=0,
            grid=(B, num_q, num_kv),
            in_specs=[
                pl.BlockSpec((pl.Squeezed(), H, tq, hd), q_map),
                pl.BlockSpec((pl.Squeezed(), H, tk, hd), kv_map),
                pl.BlockSpec((pl.Squeezed(), H, tk, hd), kv_map),
            ],
            out_specs=pl.BlockSpec((pl.Squeezed(), tq, d_out),
                                   lambda b, qi, kj: (b, qi, 0)),
            scratch_shapes=[
                pltpu.VMEM((H, tq, 1), jnp.float32),     # m
                pltpu.VMEM((H, tq, 1), jnp.float32),     # l
                pltpu.VMEM((H, tq, hd), jnp.float32),    # acc
            ],
        ),
        compiler_params=pltpu.CompilerParams(
            dimension_semantics=("parallel", "parallel", "arbitrary"),
            vmem_limit_bytes=_VMEM_LIMIT,
        ),
    )(q, k, v)
    return out[:, :T, :] if Tp != T else out


# ----------------------------------------------------------------------------
# Full GPT forward pass
# ----------------------------------------------------------------------------

def gpt_forward(in_idx, params, cfg, *, q_block=128, kv_block=256):
    B, T = in_idx.shape
    E = cfg["emb_dim"]
    H = cfg["n_heads"]
    hd = E // H
    V = cfg["vocab_size"]
    blocks = params["blocks"]

    # TODO(synk): embedding gather + dropout (p=0 -> identity) stay in XLA.
    x0 = (jnp.take(params["tok_emb"], in_idx, axis=0)
          + params["pos_emb"][:T]).reshape(B * T, E)          # f32
    x = x0.astype(jnp.bfloat16)                               # bf16 stream
    h = layernorm(x0, blocks[0]["ln1_g"], blocks[0]["ln1_b"])  # norm1, layer 0

    def to_heads(t):
        return t.reshape(B, T, H, hd).transpose(0, 2, 1, 3)   # (B,H,T,hd)

    for li, blk in enumerate(blocks):
        # ---- attention sub-block -----------------------------------------
        qkv = linear(h, blk["w_qkv"], blk["b_qkv"])            # bf16, scale folded into Q
        q, kk, vv = jnp.split(qkv, 3, axis=-1)
        ctx = flash_attention(to_heads(q), to_heads(kk), to_heads(vv),
                              q_block=q_block, kv_block=kv_block)  # (B,T,E)
        # out-proj + shortcut + LayerNorm2, fused
        x, h = linear_residual_ln(ctx.reshape(B * T, E), blk["w_o"],
                                  blk["b_o"], x, blk["ln2_g"], blk["ln2_b"])

        # ---- MLP sub-block -------------------------------------------------
        ff = linear(h, blk["w_ff1"], blk["b_ff1"], activation="gelu")
        if li + 1 < len(blocks):                               # norm1 of next
            ng, nb = blocks[li + 1]["ln1_g"], blocks[li + 1]["ln1_b"]
        else:                                                  # final_norm
            ng, nb = params["lnf_g"], params["lnf_b"]
        x, h = linear_residual_ln(ff, blk["w_ff2"], blk["b_ff2"], x, ng, nb)

    logits = linear(h, params["w_head"], params["b_head_zero"],
                    out_dtype=jnp.float32)
    return logits.reshape(B, T, V)


# ----------------------------------------------------------------------------
# Pure-JAX reference mirroring the exact dtype scheme of the kernels
# ----------------------------------------------------------------------------

def _ref_ln(x, g, b, eps=1e-5):
    mean = jnp.mean(x, axis=-1, keepdims=True)
    var = jnp.mean((x - mean) ** 2, axis=-1, keepdims=True)
    return (x - mean) * jax.lax.rsqrt(var + eps) * g + b


def gpt_reference(in_idx, params, cfg):
    B, T = in_idx.shape
    E, H, V = cfg["emb_dim"], cfg["n_heads"], cfg["vocab_size"]
    hd = E // H
    blocks = params["blocks"]

    x0 = (jnp.take(params["tok_emb"], in_idx, axis=0)
          + params["pos_emb"][:T]).reshape(B * T, E)
    x_b = x0.astype(jnp.bfloat16)
    h = _ref_ln(x0, blocks[0]["ln1_g"], blocks[0]["ln1_b"]).astype(jnp.bfloat16)
    causal = jnp.tril(jnp.ones((T, T), dtype=bool))

    def heads(t):
        return t.reshape(B, T, H, hd).transpose(0, 2, 1, 3)

    for li, blk in enumerate(blocks):
        qkv = (jnp.dot(h, blk["w_qkv"], preferred_element_type=jnp.float32)
               + blk["b_qkv"]).astype(jnp.bfloat16)
        q, k, v = (heads(t) for t in jnp.split(qkv, 3, axis=-1))
        s = jnp.einsum("bhqd,bhkd->bhqk", q, k,
                       preferred_element_type=jnp.float32)
        s = jnp.where(causal[None, None], s, -1e30)
        p = jax.nn.softmax(s, axis=-1)
        ctx = jnp.einsum("bhqk,bhkd->bhqd", p.astype(jnp.bfloat16), v,
                         preferred_element_type=jnp.float32)
        ctx = ctx.transpose(0, 2, 1, 3).reshape(B * T, E).astype(jnp.bfloat16)

        y = (jnp.dot(ctx, blk["w_o"], preferred_element_type=jnp.float32)
             + blk["b_o"] + x_b.astype(jnp.float32))
        h = _ref_ln(y, blk["ln2_g"], blk["ln2_b"]).astype(jnp.bfloat16)
        x_b = y.astype(jnp.bfloat16)

        ff = _gelu(jnp.dot(h, blk["w_ff1"], preferred_element_type=jnp.float32)
                   + blk["b_ff1"]).astype(jnp.bfloat16)
        y = (jnp.dot(ff, blk["w_ff2"], preferred_element_type=jnp.float32)
             + blk["b_ff2"] + x_b.astype(jnp.float32))
        if li + 1 < len(blocks):
            g2, b2 = blocks[li + 1]["ln1_g"], blocks[li + 1]["ln1_b"]
        else:
            g2, b2 = params["lnf_g"], params["lnf_b"]
        h = _ref_ln(y, g2, b2).astype(jnp.bfloat16)
        x_b = y.astype(jnp.bfloat16)

    logits = jnp.dot(h, params["w_head"], preferred_element_type=jnp.float32)
    return logits.reshape(B, T, V)


# ----------------------------------------------------------------------------
# parameter init (nn.Linear-like scales; weights bf16; 1/sqrt(hd) folded in Q)
# ----------------------------------------------------------------------------

def init_params(cfg, key):
    E, V = cfg["emb_dim"], cfg["vocab_size"]
    C, L = cfg["context_length"], cfg["n_layers"]
    scale = 1.0 / math.sqrt(E // cfg["n_heads"])

    def lin_w(k, fi, fo):
        b = 1.0 / math.sqrt(fi)
        return jax.random.uniform(k, (fi, fo), jnp.float32, -b, b)

    def lin_b(k, fi, fo):
        b = 1.0 / math.sqrt(fi)
        return jax.random.uniform(k, (1, fo), jnp.float32, -b, b)

    keys = jax.random.split(key, 5 + L)
    params = {
        "tok_emb": 0.5 * jax.random.normal(keys[0], (V, E), jnp.float32),
        "pos_emb": 0.5 * jax.random.normal(keys[1], (C, E), jnp.float32),
        "lnf_g": 1.0 + 0.1 * jax.random.normal(keys[2], (1, E), jnp.float32),
        "lnf_b": 0.1 * jax.random.normal(keys[3], (1, E), jnp.float32),
        "w_head": lin_w(keys[4], E, V).astype(jnp.bfloat16),
        "b_head_zero": jnp.zeros((1, V), jnp.float32),
        "blocks": [],
    }
    for li in range(L):
        ks = jax.random.split(keys[5 + li], 14)
        wq = lin_w(ks[0], E, E) * scale            # fold softmax scale into Q
        wk, wv = lin_w(ks[1], E, E), lin_w(ks[2], E, E)
        params["blocks"].append({
            "ln1_g": 1.0 + 0.1 * jax.random.normal(ks[3], (1, E), jnp.float32),
            "ln1_b": 0.1 * jax.random.normal(ks[4], (1, E), jnp.float32),
            "w_qkv": jnp.concatenate([wq, wk, wv], axis=1).astype(jnp.bfloat16),
            "b_qkv": jnp.zeros((1, 3 * E), jnp.float32),     # qkv_bias=False
            "w_o": lin_w(ks[5], E, E).astype(jnp.bfloat16),
            "b_o": lin_b(ks[6], E, E),
            "ln2_g": 1.0 + 0.1 * jax.random.normal(ks[7], (1, E), jnp.float32),
            "ln2_b": 0.1 * jax.random.normal(ks[8], (1, E), jnp.float32),
            "w_ff1": lin_w(ks[9], E, 4 * E).astype(jnp.bfloat16),
            "b_ff1": lin_b(ks[10], E, 4 * E),
            "w_ff2": lin_w(ks[11], 4 * E, E).astype(jnp.bfloat16),
            "b_ff2": lin_b(ks[12], 4 * E, E),
        })
    return params


if __name__ == "__main__":
    # ---- sub-test 1: padded / tiled linear vs reference ---------------------
    k1, k2, k3 = jax.random.split(jax.random.PRNGKey(1), 3)
    xt = 0.1 * jax.random.normal(k1, (40, 200), jnp.float32)
    wt = (0.1 * jax.random.normal(k2, (200, 300), jnp.float32)).astype(jnp.bfloat16)
    bt = 0.1 * jax.random.normal(k3, (1, 300), jnp.float32)
    yt = linear(xt, wt, bt, out_dtype=jnp.float32, tm=32, tn=128, tk=128)
    yt = jax.block_until_ready(yt)
    yt_ref = jnp.dot(xt.astype(jnp.bfloat16), wt,
                     preferred_element_type=jnp.float32) + bt
    assert yt.shape == (40, 300)
    assert jnp.allclose(yt, yt_ref, atol=2e-2, rtol=2e-2), "linear pad/tile mismatch"

    # ---- sub-test 2: flash attention with T padding + decoupled kv tile -----
    kq, kk_, kv_ = jax.random.split(jax.random.PRNGKey(2), 3)
    qa = (0.3 * jax.random.normal(kq, (1, 2, 24, 64), jnp.float32)).astype(jnp.bfloat16)
    ka = (0.3 * jax.random.normal(kk_, (1, 2, 24, 64), jnp.float32)).astype(jnp.bfloat16)
    va = jax.random.normal(kv_, (1, 2, 24, 64), jnp.float32).astype(jnp.bfloat16)
    oa = jax.block_until_ready(flash_attention(qa, ka, va, q_block=8, kv_block=16))
    sa = jnp.einsum("bhqd,bhkd->bhqk", qa, ka, preferred_element_type=jnp.float32)
    sa = jnp.where(jnp.tril(jnp.ones((24, 24), bool))[None, None], sa, -1e30)
    pa = jax.nn.softmax(sa, axis=-1)
    ctxa = jnp.einsum("bhqk,bhkd->bhqd", pa.astype(jnp.bfloat16), va,
                      preferred_element_type=jnp.float32)
    oa_ref = ctxa.transpose(0, 2, 1, 3).reshape(1, 24, 128)
    assert jnp.allclose(oa.astype(jnp.float32), oa_ref, atol=2e-2, rtol=2e-2), \
        "flash attention mismatch"

    # ---- full GPT forward ----------------------------------------------------
    cfg = dict(vocab_size=128, context_length=16, emb_dim=128,
               n_heads=2, n_layers=2, drop_rate=0.0, qkv_bias=False)
    B, T = 2, 16

    key = jax.random.PRNGKey(0)
    kp, kx = jax.random.split(key)
    params = init_params(cfg, kp)
    in_idx = jax.random.randint(kx, (B, T), 0, cfg["vocab_size"], dtype=jnp.int32)

    # q_block=kv_block=8 -> 2x2 q/kv tiles: exercises online softmax, the
    # causal kv-tile skip, and finalize-before-last-grid-step.
    gpt_fn = jax.jit(functools.partial(gpt_forward, cfg=cfg,
                                       q_block=8, kv_block=8))
    logits = jax.block_until_ready(gpt_fn(in_idx, params))

    ref = gpt_reference(in_idx, params, cfg)
    assert logits.shape == (B, T, cfg["vocab_size"])
    assert bool(jnp.all(jnp.isfinite(logits)))
    assert jnp.allclose(logits, ref, atol=5e-2, rtol=5e-2), (
        f"mismatch vs reference (max abs diff "
        f"{float(jnp.max(jnp.abs(logits - ref)))})")

    print("KERNEL_OK")
</pallas_src>

<mosaic_0001>
module attributes {stable_mosaic.version = 11 : i64} {
  func.func @_linear_kernel(%arg0: i32, %arg1: i32, %arg2: i32, %arg3: memref<32x128xf32, #tpu.memory_space<vmem>>, %arg4: memref<128x128xbf16, #tpu.memory_space<vmem>>, %arg5: memref<1x128xf32, #tpu.memory_space<vmem>>, %arg6: memref<32x128xf32, #tpu.memory_space<vmem>>, %arg7: memref<32x128xf32, #tpu.memory_space<vmem>>) attributes {dimension_semantics = [#tpu.dimension_semantics<parallel>, #tpu.dimension_semantics<parallel>, #tpu.dimension_semantics<arbitrary>], iteration_bounds = array<i64: 2, 3, 2>, scalar_prefetch = 0 : i64, scratch_operands = 1 : i64, tpu.core_type = #tpu.core_type<tc>, window_params = [{transform_indices = @transform_0, window_bounds = array<i64: 32, 128>}, {transform_indices = @transform_1, window_bounds = array<i64: 128, 128>}, {transform_indices = @transform_2, window_bounds = array<i64: 1, 128>}, {transform_indices = @transform_3, window_bounds = array<i64: 32, 128>}]} {
    %c0_i32 = arith.constant 0 : i32
    %0 = arith.cmpi eq, %arg2, %c0_i32 : i32
    %1 = arith.extui %0 : i1 to i32
    %c0_i32_0 = arith.constant 0 : i32
    %2 = arith.cmpi ne, %1, %c0_i32_0 : i32
    scf.if %2 {
      %cst_9 = arith.constant 0.000000e+00 : f32
      %13 = vector.broadcast %cst_9 : f32 to vector<32x128xf32>
      %c0_10 = arith.constant 0 : index
      %c0_11 = arith.constant 0 : index
      %14 = vector.load %arg7[%c0_10, %c0_11] : memref<32x128xf32, #tpu.memory_space<vmem>>, vector<32x128xf32>
      tpu.vector_store %arg7[%c0_10, %c0_11], %13 {strides = array<i32>} : memref<32x128xf32, #tpu.memory_space<vmem>>, vector<32x128xf32>,
    } else {
    }
    %c0 = arith.constant 0 : index
    %c0_1 = arith.constant 0 : index
    %3 = vector.load %arg7[%c0, %c0_1] : memref<32x128xf32, #tpu.memory_space<vmem>>, vector<32x128xf32>
    %c0_2 = arith.constant 0 : index
    %c0_3 = arith.constant 0 : index
    %4 = vector.load %arg3[%c0_2, %c0_3] : memref<32x128xf32, #tpu.memory_space<vmem>>, vector<32x128xf32>
    %5 = arith.truncf %4 : vector<32x128xf32> to vector<32x128xbf16>
    %c0_4 = arith.constant 0 : index
    %c0_5 = arith.constant 0 : index
    %6 = vector.load %arg4[%c0_4, %c0_5] : memref<128x128xbf16, #tpu.memory_space<vmem>>, vector<128x128xbf16>
    %cst = arith.constant dense<0.000000e+00> : vector<32x128xf32>
    %7 = tpu.matmul %5, %6, %cst {dimension_numbers = #tpu.dot_dimension_numbers<[1], [0], [0], [1], [0, 0, 1, 1], [], []>} : vector<32x128xbf16>, vector<128x128xbf16>, vector<32x128xf32> -> vector<32x128xf32>
    %8 = arith.addf %3, %7 : vector<32x128xf32>
    %c0_6 = arith.constant 0 : index
    %c0_7 = arith.constant 0 : index
    %9 = vector.load %arg7[%c0_6, %c0_7] : memref<32x128xf32, #tpu.memory_space<vmem>>, vector<32x128xf32>
    tpu.vector_store %arg7[%c0_6, %c0_7], %8 {strides = array<i32>} : memref<32x128xf32, #tpu.memory_space<vmem>>, vector<32x128xf32>,
    %c1_i32 = arith.constant 1 : i32
    %10 = arith.cmpi eq, %arg2, %c1_i32 : i32
    %11 = arith.extui %10 : i1 to i32
    %c0_i32_8 = arith.constant 0 : i32
    %12 = arith.cmpi ne, %11, %c0_i32_8 : i32
    scf.if %12 {
      %c0_9 = arith.constant 0 : index
      %c0_10 = arith.constant 0 : index
      %13 = vector.load %arg7[%c0_9, %c0_10] : memref<32x128xf32, #tpu.memory_space<vmem>>, vector<32x128xf32>
      %c0_11 = arith.constant 0 : index
      %c0_12 = arith.constant 0 : index
      %14 = vector.load %arg5[%c0_11, %c0_12] : memref<1x128xf32, #tpu.memory_space<vmem>>, vector<1x128xf32>
      %15 = vector.broadcast %14 : vector<1x128xf32> to vector<32x128xf32>
      %16 = arith.addf %13, %15 : vector<32x128xf32>
      %c0_13 = arith.constant 0 : index
      %c0_14 = arith.constant 0 : index
      %17 = vector.load %arg6[%c0_13, %c0_14] : memref<32x128xf32, #tpu.memory_space<vmem>>, vector<32x128xf32>
      tpu.vector_store %arg6[%c0_13, %c0_14], %16 {strides = array<i32>} : memref<32x128xf32, #tpu.memory_space<vmem>>, vector<32x128xf32>,
    } else {
    }
    return
  }
  func.func @transform_0(%arg0: i32, %arg1: i32, %arg2: i32) -> (i32, i32) {
    %c0_i32 = arith.constant 0 : i32
    return %arg0, %arg2 : i32, i32
  }
  func.func @transform_1(%arg0: i32, %arg1: i32, %arg2: i32) -> (i32, i32) {
    %c0_i32 = arith.constant 0 : i32
    return %arg2, %arg1 : i32, i32
  }
  func.func @transform_2(%arg0: i32, %arg1: i32, %arg2: i32) -> (i32, i32) {
    %c0_i32 = arith.constant 0 : i32
    %c0_i32_0 = arith.constant 0 : i32
    return %c0_i32, %arg1 : i32, i32
  }
  func.func @transform_3(%arg0: i32, %arg1: i32, %arg2: i32) -> (i32, i32) {
    %c0_i32 = arith.constant 0 : i32
    return %arg0, %arg1 : i32, i32
  }
}

</mosaic_0001>

<bundles_post_ra>
// kernel: tpu_custom_call.1
= control target key start
LH: loop header
LB: loop body
LE: loop exit
PB: predicated region body
PF: predicated region fallthrough
CT: control target
= control target key end

     0   :  { %s1498_s0 = inlined_call_operand.hbm [shape: f32[64,256], index: 0, kind: input, shape index: {}]   ;;  %s1499_s1 = inlined_call_operand.hbm [shape: bf16[256,384], index: 1, kind: input, shape index: {}]   ;;  %s1500_s2 = inlined_call_operand.vmem [shape: f32[1,384], index: 2, kind: input, shape index: {}]   ;;  %s1501_s3 = inlined_call_operand.hbm [shape: f32[64,384], index: 3, kind: output, shape index: {}]  }
   0x1   :  { %1517 = sst [smem:[#allocation20_spill]] %s1498_s0 }
   0x2   :  { %1518 = sst [smem:[#allocation21_spill]] %s1500_s2 }
   0x3   :  { %1519 = sst [smem:[#allocation22_spill]] %s1501_s3 }
   0x4   :  { %8 = vsyncpa [#allocation4], 0 }
   0x5   :  { %10 = vsyncpa [#allocation4 + $0x1], 0 }
   0x6   :  { %11 = vsyncpa [#allocation7], 0 }
   0x7   :  { %13 = vsyncpa [#allocation7 + $0x1], 0 }
   0x8   :  { %14 = vsyncpa [#allocation5], 0 }
   0x9   :  { %16 = vsyncpa [#allocation5 + $0x1], 0  ;;  %s1074_s12 = smov 0   ;;  %s1076_s13 = smov 0  }
   0xa   :  { %s1078_s14 = smov 0   ;;  %s1080_s15 = smov 0  }
   0xb   :  { %s1082_s16 = smov 0   ;;  %s1084_s17 = smov 0  }
   0xc   :  { %s1086_s18 = smov 0   ;;  %s1088_s19 = smov 0  }
   0xd   :  { %s1090_s20 = smov 0   ;;  %s1092_s21 = smov 0  }
   0xe   :  { %s1094_s22 = smov 0   ;;  %s1096_s23 = smov 0  }
   0xf   :  { %s1098_s24 = smov 0   ;;  %s1100_s25 = smov 0  }
  0x10   :  { %s1102_s26 = smov 0   ;;  %s1104_s27 = smov 0  }
  0x11 LB: > { %1520 = sst [smem:[#allocation12_spill]] %s1015_s21  ;;  %s582_s28 = sadd.s32 4294967295, %s1039_s27   ;;  %s1039_s27 = sphi %s1104_s27, %s22_s27   ;;  %s1035_s26 = sphi %s1102_s26, %s1579_s26   ;;  %s1031_s25 = sphi %s1100_s25, %s1578_s25   ;;  %s1027_s24 = sphi %s1098_s24, %s1577_s24   ;;  %s1023_s23 = sphi %s1096_s23, %s1576_s23   ;;  %s1019_s22 = sphi %s1094_s22, %s1575_s22   ;;  %s1015_s21 = sphi %s1092_s21, %s1574_s21   ;;  %s1011_s20 = sphi %s1090_s20, %s1573_s20   ;;  %s1007_s19 = sphi %s1088_s19, %s1572_s19   ;;  %s1003_s18 = sphi %s1086_s18, %s1571_s18   ;;  %s999_s17 = sphi %s1084_s17, %s1570_s17   ;;  %s995_s16 = sphi %s1082_s16, %s1569_s16   ;;  %s991_s15 = sphi %s1080_s15, %s1568_s15   ;;  %s987_s14 = sphi %s1078_s14, %s1567_s14   ;;  %s983_s13 = sphi %s1076_s13, %s1566_s13   ;;  %s979_s12 = sphi %s1074_s12, %s1565_s12  }
  0x12   : > { %1521 = sst [smem:[#allocation13_spill]] %s1019_s22  ;;  %s34_s29 = sadd.s32 1, %s1027_s24 }
  0x13   : > { %1522 = sst [smem:[#allocation14_spill]] %s1023_s23  ;;  %p1154_p0 = scmp.ge.s32.totalorder %s34_s29, 2 }
  0x14   : > { %p57_p1 = scmp.ne.s32.totalorder %s1011_s20, %s1007_s19  ;;  %p1506_p2 = scmp.eq.s32.totalorder %s1039_s27, 0 }
  0x15   : > { %s1581_s29 = smov (%p1154_p0, %s34_s29), 0  ;;  %p63_p3 = scmp.ne.s32.totalorder %s1007_s19, %s1003_s18 }
  0x16   : > { %1524 = sst [smem:[#allocation15_spill]] %s1581_s29  ;;  %s1170_s6 = ssub.s32 %s1027_s24, %s1581_s29 }
  0x17   : > { %p1172_p4 = scmp.eq.s32.totalorder %s582_s28, 0  ;;  %p1178_p5 = por %p1506_p2, %p57_p1 }
  0x18   : > { %p1182_p6 = scmp.eq.s32.totalorder %s582_s28, 11  ;;  %p1505_p8 = scmp.lt.s32.totalorder %s1039_s27, 12 }
  0x19   : > { %s1525_s7 = scalar_select %p1172_p4, 1, 0 }
  0x1a   : > { %s1527_s9 = scalar_select %p1182_p6, 1, 0 }
  0x1b   : > { %p1188_p7 = por %p1172_p4, %p63_p3  ;;  %s169_s11 = sand.u32 1, %s1011_s20  }
  0x1c   : > { %s586_s18 = sshll.u32 %s169_s11, 5  ;;  %s615_s5 = sshll.u32 %s1035_s26, 3 }
  0x1d   : > { %s1528_s10 = scalar_select %p1188_p7, 1, 0 }
  0x1e   : > { %s179_s4 = sadd.s32 %s1027_s24, %s615_s5  ;;  %s173_s29 = scalar_lea.vmem [#allocation3], %s586_s18 }
  0x1f   : > { %s182_s3 = sshll.u32 %s173_s29, 4  ;;  %s589_s23 = sshll.u32 %s179_s4, 7  ;;  %s1196_s3 = int_to_ptr.vmem [resolvable:$true] %s182_s3 }
  0x20   : > { %s1529_s0 = sld [smem:[#allocation20_spill]]  ;;  %p1207_p9 = pnand %p1505_p8, %p1178_p5 }
  0x21   : > { %s1211_s29 = scalar_lea.sflag [#allocation4], %s169_s11 }
  0x22   : > { %p815_p11 = pneg %p1207_p9 }
  0x26   : > { %s1201_s2 = scalar_lea.hbm %s1529_s0, %s589_s23  ;;  %s818_s5 = scalar_lea.hbm %s1529_s0, 2048 }
  0x27   : > { %s813_s4 = scalar_lea.hbm %s1201_s2, 512  ;;  %p819_p1 = scmp.lt.u32.totalorder %s1201_s2, %s1529_s0 }
  0x28   : > { %p814_p10 = scmp.ne.s32.totalorder %s1201_s2, %s813_s4  ;;  %p820_p3 = scmp.lt.u32.totalorder %s818_s5, %s813_s4 }
  0x29   : > { %p822_p8 = scmp.lt.u32.totalorder %s813_s4, %s1201_s2 }
  0x2a   : > { %p816_p12 = pnand %p815_p11, %p814_p10  ;;  %p821_p5 = por %p820_p3, %p819_p1 }
  0x2c   : > { %p817_p13 = pneg %p816_p12  ;;  %p823_p2 = por %p822_p8, %p821_p5 }
  0x2e   : > { %p824_p7 = pnand %p823_p2, %p817_p13 }
  0x30   : > { %827 = shalt.err (!%p824_p7)
}
  0x31   : > { %s828_s11 = scalar_lea.vmem %s1196_s3, 512  ;;  %s1041_s28 = smov [#allocation3]  }
  0x32   : > { %p829_p10 = scmp.ne.s32.totalorder %s1196_s3, %s828_s11  ;;  %s833_s21 = sshll.u32 %s1041_s28, 4  ;;  %s834_s21 = int_to_ptr.vmem [resolvable:$false] %s833_s21 }
  0x33   : > { %s835_s23 = scalar_lea.vmem %s834_s21, 1024  ;;  %p836_p4 = scmp.lt.s32.totalorder %s1196_s3, %s834_s21 }
  0x34   : > { %p831_p12 = pnand %p829_p10, %p815_p11  ;;  %p837_p1 = scmp.lt.s32.totalorder %s835_s23, %s828_s11 }
  0x36   : > { %p832_p6 = pneg %p831_p12  ;;  %p838_p3 = por %p837_p1, %p836_p4 }
  0x38   : > { %p839_p8 = pnand %p838_p3, %p832_p6 }
  0x3a   : > { %842 = shalt.err (!%p839_p8)
}
  0x3b   : > { %s1042_s4 = smov 256   ;;  %s1043_s5 = smov 128  }
  0x3c   : > { %s1044_s8 = smov 8   ;;  %p594_p2 = scmp.ge.s32.totalorder %s1039_s27, 1 }
  0x3d   : > { %657 = dma.hbm_to_vmem [thread:$0]  (!%p1207_p9), %s1201_s2, 512, %s1196_s3, %s1211_s29, %s1042_s4, %s1043_s5, %s1044_s8  }
  0x3e   : > { %p219_p4 = scmp.lt.s32.totalorder %s1039_s27, 13  ;;  %s583_s11 = sadd.s32 4294967294, %s1039_s27  }
  0x3f   : > { %s37_s28 = sadd.s32 1, %s1031_s25  ;;  %s78_s21 = sadd.s32 1, %s999_s17 }
  0x40   : > { %p1241_p6 = pnand %p594_p2, %p219_p4  ;;  %s1583_s28 = smov (!%p1154_p0, %s37_s28), %s1031_s25 }
  0x41   : > { %p85_p7 = scmp.ne.s32.totalorder %s999_s17, %s995_s16  ;;  %p91_p9 = scmp.ne.s32.totalorder %s995_s16, %s991_s15 }
  0x42   : > { %p39_p11 = scmp.ge.s32.totalorder %s1583_s28, 3  ;;  %s132_s2 = sadd.s32 1, %s987_s14 }
  0x43   : > { %p1532_p13 = scmp.eq.s32.totalorder %s1039_s27, 0  ;;  %p1534_p10 = scmp.ne.s32.totalorder %s1525_s7, 0 }
  0x44   : > { %s1585_s28 = smov (%p39_p11, %s1583_s28), 0  ;;  %s1538_s30 = sadd.s32 1, %s1035_s26 }
  0x45   : > { %p1258_p5 = por %p85_p7, %p1532_p13  ;;  %p1264_p12 = por %p91_p9, %p1534_p10 }
  0x46   : > { %1537 = sst [smem:[#allocation17_spill]] %s1585_s28  ;;  %s1587_s30 = smov (!%p39_p11, %s1538_s30), %s1035_s26 }
  0x47   : > { %s1535_s22 = scalar_select %p1264_p12, 1, 0 }
  0x48   : > { %s74_s15 = ssub.s32 %s1031_s25, %s1585_s28  ;;  %p142_p0 = scmp.ne.s32.totalorder %s987_s14, %s983_s13 }
  0x49   : > { %1536 = sst [smem:[#allocation16_spill]] %s1535_s22  ;;  %p43_p1 = scmp.ge.s32.totalorder %s1587_s30, 2 }
  0x4a   : > { %s75_s29 = sor.u32 %s74_s15, %s1170_s6  ;;  %p1539_p8 = scmp.ne.s32.totalorder %s1527_s9, 0 }
  0x4b   : > { %p76_p3 = scmp.eq.s32.totalorder %s75_s29, 0  ;;  %s1589_s30 = smov (%p43_p1, %s1587_s30), 0 }
  0x4c   : > { %p1280_p2 = por %p1539_p8, %p142_p0  ;;  %1542 = sst [smem:[#allocation19_spill]] %s1589_s30 }
  0x4d   : > { %s1287_s23 = scalar_select %p76_p3, %s999_s17, %s78_s21  }
  0x4e   : > { %s1540_s7 = scalar_select %p1280_p2, 1, 0 }
  0x4f   : > { %s45_s4 = ssub.s32 %s1035_s26, %s1589_s30  ;;  %p148_p4 = scmp.ne.s32.totalorder %s983_s13, %s979_s12 }
  0x50   : > { %1541 = sst [smem:[#allocation18_spill]] %s1540_s7  ;;  %s47_s5 = sor.u32 %s1170_s6, %s45_s4 }
  0x51   : > { %s129_s8 = sor.u32 %s74_s15, %s45_s4  ;;  %p48_p7 = scmp.eq.s32.totalorder %s47_s5, 0 }
  0x52   : > { %p130_p9 = scmp.eq.s32.totalorder %s129_s8, 0  ;;  %p149_p11 = scmp.eq.s32.totalorder %s583_s11, 11 }
  0x53   : > { %s192_s9 = sand.u32 1, %s999_s17   ;;  %s1543_s29 = sadd.s32 1, %s1011_s20 }
  0x54   : > { %s1298_s0 = scalar_select %p48_p7, %s1011_s20, %s1543_s29  }
  0x55   : > { %s1301_s28 = scalar_select %p130_p9, %s987_s14, %s132_s2  }
  0x56   : > { %p1303_p13 = por %p149_p11, %p148_p4  ;;  %s590_s22 = sshll.u32 %s192_s9, 6 }
  0x57   : > { %s646_s21 = smul.u32 48, %s1027_s24  ;;  %p1545_p10 = scmp.lt.s32.totalorder %s1039_s27, 12 }
  0x58   : > { %s1544_s7 = scalar_select %p1303_p13, 1, 0 }
  0x59   : > { %p1312_p0 = pnand %p1545_p10, %p1258_p5  ;;  %s202_s11 = sadd.s32 %s1031_s25, %s646_s21 }
  0x5a   : > { %s196_s15 = scalar_lea.vmem [#allocation6], %s590_s22  ;;  %s593_s5 = sshll.u32 %s202_s11, 6 }
  0x5b   : > { %s205_s4 = sshll.u32 %s196_s15, 4  ;;  %s1322_s29 = scalar_lea.hbm %s1499_s1, %s593_s5  ;;  %s1317_s4 = int_to_ptr.vmem [resolvable:$true] %s205_s4 }
  0x5c   : > { %s1324_s3 = scalar_lea.sflag [#allocation7], %s192_s9  ;;  %s843_s30 = scalar_lea.hbm %s1322_s29, 1024 }
  0x5d   : > { %p844_p5 = scmp.ne.s32.totalorder %s1322_s29, %s843_s30  ;;  %p845_p1 = pneg %p1312_p0 }
  0x5e   : > { %s848_s11 = scalar_lea.hbm %s1499_s1, 6144  ;;  %p849_p4 = scmp.lt.u32.totalorder %s1322_s29, %s1499_s1 }
  0x5f   : > { %p846_p3 = pnand %p845_p1, %p844_p5  ;;  %p850_p7 = scmp.lt.u32.totalorder %s848_s11, %s843_s30 }
  0x60   : > { %p852_p11 = scmp.lt.u32.totalorder %s843_s30, %s1322_s29 }
  0x61   : > { %p847_p8 = pneg %p846_p3  ;;  %p851_p9 = por %p850_p7, %p849_p4 }
  0x63   : > { %p853_p10 = por %p852_p11, %p851_p9 }
  0x65   : > { %p854_p13 = pnand %p853_p10, %p847_p8 }
  0x67   : > { %857 = shalt.err (!%p854_p13)
}
  0x68   : > { %s858_s9 = scalar_lea.vmem %s1317_s4, 1024  ;;  %s1045_s2 = smov [#allocation6]  }
  0x69   : > { %p859_p5 = scmp.ne.s32.totalorder %s1317_s4, %s858_s9  ;;  %s863_s8 = sshll.u32 %s1045_s2, 4  ;;  %s864_s8 = int_to_ptr.vmem [resolvable:$false] %s863_s8 }
  0x6a   : > { %s865_s22 = scalar_lea.vmem %s864_s8, 2048  ;;  %p866_p12 = scmp.lt.s32.totalorder %s1317_s4, %s864_s8 }
  0x6b   : > { %p861_p3 = pnand %p859_p5, %p845_p1  ;;  %p867_p4 = scmp.lt.s32.totalorder %s865_s22, %s858_s9 }
  0x6d   : > { %p862_p2 = pneg %p861_p3  ;;  %p868_p7 = por %p867_p4, %p866_p12 }
  0x6f   : > { %p869_p9 = pnand %p868_p7, %p862_p2 }
  0x71   : > { %872 = shalt.err (!%p869_p9)
}
  0x72   : > { %s1046_s30 = smov 192   ;;  %s1047_s21 = smov 64  }
  0x73   : > { %s1048_s11 = smov 4   ;;  %223 = sbr.rel (%p1241_p6) target bundleno = 441 (0x1b9), region = 32 }
  0x74   : > { %660 = dma.hbm_to_vmem [thread:$0]  (!%p1312_p0), %s1322_s29, 1024, %s1317_s4, %s1324_s3, %s1046_s30, %s1047_s21, %s1048_s11  }
  0x75   : > { %s225_s15 = sand.u32 (!%p1241_p6), 1, %s1007_s19   ;;  %p1547_p12 = scmp.ne.s32.totalorder (!%p1241_p6), %s1528_s10, 0 }
  0x76   : > { %s595_s5 = sshll.u32 (!%p1241_p6), %s225_s15, 5  ;;  %s226_s9 = scalar_lea.sflag (!%p1241_p6), [#allocation4], %s225_s15 }
  0x77   : > { %s1355_s2 = scalar_lea.vmem (!%p1241_p6), [#allocation3], %s595_s5 }
  0x7a   : > { %966 = dma.done.wait (%p1547_p12), %s226_s9, 512  }
  0x7b   : > { %968 = vsyncadd (%p1547_p12), %s226_s9, 4294966784  ;;  %s1548_s8 = sld [smem:[#allocation16_spill]]  ;;  %s234_s22 = sand.u32 1, %s995_s16  }
  0x7c   : > { %s596_s6 = sshll.u32 %s234_s22, 6  ;;  %s235_s4 = scalar_lea.sflag [#allocation7], %s234_s22 }
  0x7d   : > { %s1362_s29 = scalar_lea.vmem [#allocation6], %s596_s6 }
  0x81   : > { %p1549_p6 = scmp.ne.s32.totalorder %s1548_s8, 0 }
  0x83   : > { %970 = dma.done.wait (%p1549_p6), %s235_s4, 1024  }
  0x84   : > { %972 = vsyncadd (%p1549_p6), %s235_s4, 4294966272  ;;  %s1550_s18 = sld [smem:[#allocation13_spill]]  ;;  %s266_s3 = sand.u32 1, %s983_s13  }
  0x85   : > { %s597_s10 = sshll.u32 %s266_s3, 5  ;;  %s1551_s11 = sld [smem:[#allocation21_spill]] }
  0x86   : > { %s1379_s5 = scalar_lea.vmem [#allocation8], %s597_s10  ;;  %s1552_s9 = sld [smem:[#allocation12_spill]] }
  0x8a   : > { %p271_p2 = scmp.lt.s32.totalorder %s1550_s18, 2 }
  0x8c   : > { %s1591_s18 = smov (!%p271_p2, %s1550_s18), 2  ;;  %p598_p13 = scmp.ne.s32.totalorder %s1552_s9, 0 }
  0x8d   : > { %s273_s15 = scalar_lea.vmem %s1551_s11, %s1591_s18  ;;  %v1049_v0 = vmov (!%p598_p13), 0.0  }
  0x8e   : > { %279 = sbr.rel (%p598_p13) target bundleno = 149 (0x95), region = 44  ;;  %280 = vst [vmem:[#allocation2] sm:$0xff] (!%p598_p13), %v1049_v0  ;;  %281 = vst [vmem:[#allocation2 + $0x8] sm:$0xff] (!%p598_p13), %v1049_v0 }
  0x8f   : > { %282 = vst [vmem:[#allocation2 + $0x10] sm:$0xff] (!%p598_p13), %v1049_v0  ;;  %283 = vst [vmem:[#allocation2 + $0x18] sm:$0xff] (!%p598_p13), %v1049_v0 }
  0x95 PF: > { %v805_v1 = vld [vmem:[%s1362_s29] sm:$0xff]   ;;  %v806_v2 = vld [vmem:[%s1362_s29 + $0x8] sm:$0xff]   ;;  %v807_v3 = vld [vmem:[%s1362_s29 + $0x10] sm:$0xff]  }
  0x96   : > { %626 = vmatprep.subr.bf16.mxu0 %v805_v1  ;;  %v808_v4 = vld [vmem:[%s1362_s29 + $0x18] sm:$0xff]   ;;  %v288_v5 = vld [vmem:[%s1355_s2] sm:$0xff]  ;;  %v289_v6 = vld [vmem:[%s1355_s2 + $0x8] sm:$0xff] }
  0x97   : > { %627 = vmatpush3.bf16.msra.mxu0 %v805_v1  ;;  %v292_v7 = vpack.c.bf16 %v289_v6, %v288_v5  ;;  %v809_v8 = vld [vmem:[%s1362_s29 + $0x20] sm:$0xff]   ;;  %v810_v9 = vld [vmem:[%s1362_s29 + $0x28] sm:$0xff]   ;;  %v811_v10 = vld [vmem:[%s1362_s29 + $0x30] sm:$0xff]  }
  0x98   : > { %628 = vmatprep.subr.bf16.mxu0 %v806_v2  ;;  %v812_v11 = vld [vmem:[%s1362_s29 + $0x38] sm:$0xff]   ;;  %v290_v12 = vld [vmem:[%s1355_s2 + $0x10] sm:$0xff]  ;;  %v284_v16 = vld [vmem:[#allocation2] sm:$0xff] }
  0x99   : > { %642 = vmatprep.mubr.bf16.mxu0 %v292_v7  ;;  %v291_v13 = vld [vmem:[%s1355_s2 + $0x18] sm:$0xff]  ;;  %v286_v15 = vld [vmem:[#allocation2 + $0x10] sm:$0xff]  ;;  %v285_v21 = vld [vmem:[#allocation2 + $0x8] sm:$0xff]  ;;  %s1553_s2 = sld [smem:[#allocation12_spill]] }
  0x9a   : > { %v293_v14 = vpack.c.bf16 %v291_v13, %v290_v12  ;;  %v287_v18 = vld [vmem:[#allocation2 + $0x18] sm:$0xff] }
  0x9b   : > { %629 = vmatpush3.bf16.msra.mxu0 %v806_v2 }
  0x9c   : > { %630 = vmatprep.subr.bf16.mxu0 %v807_v3 }
  0x9f   : > { %631 = vmatpush3.bf16.msra.mxu0 %v807_v3  ;;  %p607_p0 = scmp.ne.s32.totalorder %s1553_s2, 1 }
  0xa0   : > { %632 = vmatprep.subr.bf16.mxu0 %v808_v4  ;;  %v608_v28 = vld [vmem:[%s273_s15] ss:$0 sm:$0xff] (!%p607_p0) }
  0xa3   : > { %633 = vmatpush3.bf16.msra.mxu0 %v808_v4 }
  0xa4   : > { %634 = vmatprep.subr.bf16.mxu0 %v809_v8 }
  0xa7   : > { %635 = vmatpush3.bf16.msra.mxu0 %v809_v8 }
  0xa8   : > { %636 = vmatprep.subr.bf16.mxu0 %v810_v9 }
  0xab   : > { %637 = vmatpush3.bf16.msra.mxu0 %v810_v9 }
  0xac   : > { %638 = vmatprep.subr.bf16.mxu0 %v811_v10 }
  0xaf   : > { %639 = vmatpush3.bf16.msra.mxu0 %v811_v10 }
  0xb0   : > { %640 = vmatprep.subr.bf16.mxu0 %v812_v11 }
  0xb3   : > { %641 = vmatpush3.bf16.msra.mxu0 %v812_v11 }
  0xb6   : > { %643 = vmatmul.mubr.bf16.vlgmr.msra.gmra.mrb[0].mxu0 %v293_v14 }
 0x189   : > { %v644_v17 = vpop.f32.mrb[0].mxu0  ;;  %418 = sbr.rel (%p607_p0) target bundleno = 410 (0x19a), region = 48 }
 0x18a   : > { %v409_v19 = vadd.f32 %v644_v17, %v286_v15  ;;  %v392_v20 = vpop.f32.mrb[1].mxu0 }
 0x18b   : > { %v407_v22 = vadd.f32 %v392_v20, %v284_v16  ;;  %v645_v23 = vpop.f32.mrb[2].mxu0 }
 0x18c   : > { %413 = vst [vmem:[#allocation2 + $0x10] sm:$0xff] %v409_v19  ;;  %v410_v24 = vadd.f32 %v645_v23, %v287_v18  ;;  %v395_v25 = vpop.f32.mrb[3].mxu0 }
 0x18d   : > { %411 = vst [vmem:[#allocation2] sm:$0xff] %v407_v22  ;;  %v408_v26 = vadd.f32 %v395_v25, %v285_v21 }
 0x18e   : > { %414 = vst [vmem:[#allocation2 + $0x18] sm:$0xff] %v410_v24 }
 0x18f   : > { %412 = vst [vmem:[#allocation2 + $0x8] sm:$0xff] %v408_v26 }
 0x193   : > { %v421_v32 = vld [vmem:[#allocation2 + $0x10] sm:$0xff] }
 0x194   : > { %v419_v27 = vld [vmem:[#allocation2] sm:$0xff]  ;;  %v432_v34 = vadd.f32 %v608_v28, %v421_v32 }
 0x195   : > { %v430_v30 = vadd.f32 %v608_v28, %v419_v27  ;;  %v422_v33 = vld [vmem:[#allocation2 + $0x18] sm:$0xff] }
 0x196   : > { %v420_v29 = vld [vmem:[#allocation2 + $0x8] sm:$0xff]  ;;  %v433_v35 = vadd.f32 %v608_v28, %v422_v33  ;;  %436 = vst [vmem:[%s1379_s5 + $0x10] sm:$0xff] %v432_v34 }
 0x197   : > { %v431_v31 = vadd.f32 %v608_v28, %v420_v29  ;;  %434 = vst [vmem:[%s1379_s5] sm:$0xff] %v430_v30 }
 0x198   : > { %437 = vst [vmem:[%s1379_s5 + $0x18] sm:$0xff] %v433_v35 }
 0x199   : > { %435 = vst [vmem:[%s1379_s5 + $0x8] sm:$0xff] %v431_v31 }
 0x19a PF: > { %s1555_s4 = sld [smem:[#allocation14_spill]]  ;;  %s1556_s29 = sld [smem:[#allocation13_spill]] }
 0x19b   : > { %s1557_s18 = sld [smem:[#allocation18_spill]]  ;;  %s454_s30 = sshll.u32 %s1379_s5, 4  ;;  %s1407_s30 = int_to_ptr.vmem [resolvable:$true] %s454_s30 }
 0x19c   : > { %s1558_s2 = sld [smem:[#allocation22_spill]]  ;;  %s1416_s22 = scalar_lea.sflag [#allocation5], %s266_s3 }
 0x19d   : > { %s873_s6 = scalar_lea.vmem %s1407_s30, 512  ;;  %s1050_s5 = smov [#allocation8]  }
 0x19e   : > { %p874_p1 = scmp.ne.s32.totalorder %s1407_s30, %s873_s6 }
 0x1a0   : > { %s647_s10 = smul.u32 12, %s1555_s4  ;;  %s877_s4 = sshll.u32 %s1050_s5, 4  ;;  %s878_s4 = int_to_ptr.vmem [resolvable:$false] %s877_s4 }
 0x1a1   : > { %p1559_p8 = scmp.ne.s32.totalorder %s1557_s18, 0  ;;  %p880_p5 = scmp.lt.s32.totalorder %s1407_s30, %s878_s4 }
 0x1a2   : > { %s451_s21 = sadd.s32 %s1556_s29, %s647_s10  ;;  %s879_s29 = scalar_lea.vmem %s878_s4, 1024 }
 0x1a3   : > { %s612_s11 = sshll.u32 %s451_s21, 7  ;;  %p875_p11 = pnand %p874_p1, %p1559_p8 }
 0x1a4   : > { %s1412_s8 = scalar_lea.hbm %s1558_s2, %s612_s11  ;;  %p881_p3 = scmp.lt.s32.totalorder %s879_s29, %s873_s6 }
 0x1a5   : > { %p876_p10 = pneg %p875_p11 }
 0x1a6   : > { %p882_p4 = por %p881_p3, %p880_p5 }
 0x1a8   : > { %p883_p7 = pnand %p882_p4, %p876_p10 }
 0x1aa   : > { %886 = shalt.err (!%p883_p7)
}
 0x1ab   : > { %s887_s3 = scalar_lea.hbm %s1412_s8, 512  ;;  %s891_s11 = scalar_lea.hbm %s1558_s2, 3072 }
 0x1ac   : > { %p888_p9 = scmp.ne.s32.totalorder %s1412_s8, %s887_s3  ;;  %p892_p2 = scmp.lt.u32.totalorder %s1412_s8, %s1558_s2 }
 0x1ad   : > { %p893_p13 = scmp.lt.u32.totalorder %s891_s11, %s887_s3  ;;  %p895_p1 = scmp.lt.u32.totalorder %s887_s3, %s1412_s8 }
 0x1ae   : > { %p889_p12 = pnand %p888_p9, %p1559_p8 }
 0x1af   : > { %p894_p0 = por %p893_p13, %p892_p2 }
 0x1b0   : > { %p890_p6 = pneg %p889_p12 }
 0x1b1   : > { %p896_p11 = por %p895_p1, %p894_p0 }
 0x1b3   : > { %p897_p10 = pnand %p896_p11, %p890_p6 }
 0x1b5   : > { %900 = shalt.err (!%p897_p10)
}
 0x1b6   : > { %s1051_s6 = smov 128   ;;  %s1052_s5 = smov 384  }
 0x1b7   : > { %s1053_s4 = smov 8  }
 0x1b8   : > { %652 = dma.vmem_to_hbm [thread:$0]  (%p1559_p8), %s1407_s30, 512, %s1412_s8, %s1416_s22, %s1051_s6, %s1052_s5, %s1053_s4  }
 0x1b9 PF: > { %p666_p5 = scmp.ge.s32.totalorder %s1039_s27, 2  ;;  %s469_s29 = sand.u32 1, %s979_s12  }
 0x1ba   : > { %p1560_p3 = scmp.ne.s32.totalorder %s1544_s7, 0  ;;  %s470_s3 = scalar_lea.sflag [#allocation5], %s469_s29 }
 0x1bc   : > { %p662_p4 = pnand %p666_p5, %p1560_p3 }
 0x1be   : > { %974 = dma.done.wait (!%p662_p4), %s470_s3, 512  }
 0x1bf   : > { %976 = vsyncadd (!%p662_p4), %s470_s3, 4294966784  ;;  %s22_s27 = sadd.s32 1, %s1039_s27   ;;  %s1562_s7 = sld [smem:[#allocation15_spill]] }
 0x1c0   : > { %p1445_p7 = scmp.ge.s32.totalorder %s22_s27, 14   ;;  %s1563_s30 = sld [smem:[#allocation17_spill]] }
 0x1c1   : > { %s1564_s8 = sld [smem:[#allocation19_spill]]  ;;  %s1565_s12 = smov %s983_s13 }
 0x1c2   : > { %s1566_s13 = smov %s987_s14  ;;  %s1567_s14 = smov %s1301_s28 }
 0x1c3   : > { %s1568_s15 = smov %s995_s16  ;;  %s1569_s16 = smov %s999_s17 }
 0x1c4   : > { %s1570_s17 = smov %s1287_s23  ;;  %s1571_s18 = smov %s1007_s19 }
 0x1c5   : > { %s1572_s19 = smov %s1011_s20  ;;  %s1573_s20 = smov %s1298_s0 }
 0x1c6   : > { %s1574_s21 = smov %s1027_s24  ;;  %s1575_s22 = smov %s1031_s25 }
 0x1c7   : > { %s1576_s23 = smov %s1035_s26  ;;  %s1577_s24 = smov %s1562_s7 }
 0x1c8   : > { %s1578_s25 = smov %s1563_s30  ;;  %s1579_s26 = smov %s1564_s8 }
 0x1c9   :  { %21 = sbr.rel (!%p1445_p7) target bundleno = 17 (0x11), region = 101 }
 0x1d0   :  { %475 = vsyncpa [#allocation4], 1 }
 0x1d1   :  { %477 = vsyncpa [#allocation4 + $0x1], 1 }
 0x1d2   :  { %478 = vsyncpa [#allocation7], 1 }
 0x1d3   :  { %480 = vsyncpa [#allocation7 + $0x1], 1 }
 0x1d4   :  { %481 = vsyncpa [#allocation5], 1 }
 0x1d5   :  { %483 = vsyncpa [#allocation5 + $0x1], 1 }

</bundles_post_ra>
